<compile_context>
chip_gen: v5e
topology: v5e:2x2
jax: 0.10.0
libtpu: 0.0.40
codegen_flags: <defaults>
</compile_context>

<pallas_src>
import functools

import jax
import jax.numpy as jnp
from jax.experimental import pallas as pl
from jax.experimental.pallas import tpu as pltpu


def _policy_forward_kernel(x_ref,
                           w1_ref, b1_ref,
                           w2_ref, b2_ref,
                           wh_ref, bh_ref,
                           mu_ref, ls_ref,
                           *, action_dim):
    # in-kernel f32 -> bf16 cast of the activations (free under MXU/HBM bound)
    x = x_ref[...].astype(jnp.bfloat16)

    # l1 + ReLU  (bf16 operands, f32 accumulation)
    h = jnp.dot(x, w1_ref[...], preferred_element_type=jnp.float32) + b1_ref[...]
    h = jnp.maximum(h, 0.0).astype(jnp.bfloat16)

    # l2 + ReLU
    h = jnp.dot(h, w2_ref[...], preferred_element_type=jnp.float32) + b2_ref[...]
    h = jnp.maximum(h, 0.0).astype(jnp.bfloat16)

    # fused heads: columns [0, A) = mu, [A, 2A) = log_std, rest = zero pad.
    # The 128-lane pad keeps a single MXU pass; only useful columns are stored.
    heads = jnp.dot(h, wh_ref[...], preferred_element_type=jnp.float32) + bh_ref[...]
    lanes = heads.shape[-1]

    # mu columns already sit at lane offset 0.
    mu_ref[...] = heads[:, :action_dim]

    # bring log_std columns [A, 2A) to lane offset 0 with an XLU rotate, then
    # clamp(-20, 2) on just those columns (no full-slab iota mask needed).
    ls = pltpu.roll(heads, lanes - action_dim, 1)[:, :action_dim]
    ls_ref[...] = jnp.clip(ls, -20.0, 2.0)


def prepare_params(params):
    """One-time parameter prep (hoisted out of the per-call forward path)."""
    action_dim = params["wmu"].shape[1]
    out_pad = max(128, ((2 * action_dim + 127) // 128) * 128)

    wh = jnp.concatenate([params["wmu"], params["wls"]], axis=1)
    bh = jnp.concatenate([params["bmu"], params["bls"]], axis=1)
    wh = jnp.pad(wh, ((0, 0), (0, out_pad - 2 * action_dim)))
    bh = jnp.pad(bh, ((0, 0), (0, out_pad - 2 * action_dim)))

    return dict(
        w1=params["w1"].astype(jnp.bfloat16),
        b1=params["b1"].astype(jnp.float32),
        w2=params["w2"].astype(jnp.bfloat16),
        b2=params["b2"].astype(jnp.float32),
        wh=wh.astype(jnp.bfloat16),
        bh=bh.astype(jnp.float32),
        action_dim=action_dim,
    )


def _pick_batch_tile(batch, block_batch):
    """Tile size: big (VMEM is nowhere near the limit), >=2 grid steps when
    the batch is large enough so ("parallel",) shards across both v7x TCs."""
    if batch <= 64:
        return batch  # single full-array block
    half = -(-batch // 2)
    half = ((half + 15) // 16) * 16      # multiple of 16 (bf16 sublane pack)
    return max(16, min(block_batch, half))


def policy_forward(x, prep, *, block_batch=1024):
    """PolicyNetwork forward pass in one Pallas kernel.

    x: (batch, state_dim) float32
    prep: output of prepare_params()
    returns: (mu, log_std), each (batch, action_dim) float32
    """
    batch, state_dim = x.shape
    hidden = prep["w1"].shape[1]
    action_dim = prep["action_dim"]
    out_pad = prep["wh"].shape[1]

    tb = _pick_batch_tile(batch, block_batch)
    grid = (pl.cdiv(batch, tb),)

    kernel = functools.partial(_policy_forward_kernel, action_dim=action_dim)

    mu, log_std = pl.pallas_call(
        kernel,
        out_shape=(jax.ShapeDtypeStruct((batch, action_dim), jnp.float32),
                   jax.ShapeDtypeStruct((batch, action_dim), jnp.float32)),
        grid_spec=pltpu.PrefetchScalarGridSpec(
            num_scalar_prefetch=0,
            grid=grid,
            in_specs=[
                # activations: tiled along batch (f32, cast in-kernel)
                pl.BlockSpec((tb, state_dim), lambda i: (i, 0)),
                # weights / biases: constant index_map -> VMEM-resident
                pl.BlockSpec((state_dim, hidden), lambda i: (0, 0)),
                pl.BlockSpec((1, hidden), lambda i: (0, 0)),
                pl.BlockSpec((hidden, hidden), lambda i: (0, 0)),
                pl.BlockSpec((1, hidden), lambda i: (0, 0)),
                pl.BlockSpec((hidden, out_pad), lambda i: (0, 0)),
                pl.BlockSpec((1, out_pad), lambda i: (0, 0)),
            ],
            out_specs=(pl.BlockSpec((tb, action_dim), lambda i: (i, 0)),
                       pl.BlockSpec((tb, action_dim), lambda i: (i, 0))),
        ),
        compiler_params=pltpu.CompilerParams(
            dimension_semantics=("parallel",)),
    )(x, prep["w1"], prep["b1"], prep["w2"], prep["b2"], prep["wh"], prep["bh"])

    return mu, log_std


def init_params(key, state_dim, action_dim, hidden_dim):
    """Deterministic PyTorch-Linear-style uniform init; weights stored (in, out)."""
    def linear(k, fan_in, fan_out):
        kw, kb = jax.random.split(k)
        bound = 1.0 / jnp.sqrt(jnp.float32(fan_in))
        w = jax.random.uniform(kw, (fan_in, fan_out), jnp.float32, -bound, bound)
        b = jax.random.uniform(kb, (1, fan_out), jnp.float32, -bound, bound)
        return w, b

    k1, k2, k3, k4 = jax.random.split(key, 4)
    w1, b1 = linear(k1, state_dim, hidden_dim)
    w2, b2 = linear(k2, hidden_dim, hidden_dim)
    wmu, bmu = linear(k3, hidden_dim, action_dim)
    wls, bls = linear(k4, hidden_dim, action_dim)
    return dict(w1=w1, b1=b1, w2=w2, b2=b2, wmu=wmu, bmu=bmu, wls=wls, bls=bls)


if __name__ == "__main__":
    batch, state_dim, action_dim, hidden_dim = 8, 16, 8, 256

    key = jax.random.PRNGKey(0)
    kx, kp = jax.random.split(key)
    x = jax.random.normal(kx, (batch, state_dim), dtype=jnp.float32)
    params = init_params(kp, state_dim, action_dim, hidden_dim)

    prep = prepare_params(params)          # one-time weight prep
    mu, log_std = policy_forward(x, prep)
    jax.block_until_ready((mu, log_std))

    # Pure-JAX reference at matching (bf16 operand / f32 accumulate) precision.
    xb = x.astype(jnp.bfloat16)
    w1b = params["w1"].astype(jnp.bfloat16)
    w2b = params["w2"].astype(jnp.bfloat16)
    wmub = params["wmu"].astype(jnp.bfloat16)
    wlsb = params["wls"].astype(jnp.bfloat16)
    h = jnp.maximum(jnp.dot(xb, w1b, preferred_element_type=jnp.float32)
                    + params["b1"], 0.0).astype(jnp.bfloat16)
    h = jnp.maximum(jnp.dot(h, w2b, preferred_element_type=jnp.float32)
                    + params["b2"], 0.0).astype(jnp.bfloat16)
    mu_ref = jnp.dot(h, wmub, preferred_element_type=jnp.float32) + params["bmu"]
    ls_ref = jnp.clip(jnp.dot(h, wlsb, preferred_element_type=jnp.float32)
                      + params["bls"], -20.0, 2.0)

    assert mu.shape == (batch, action_dim) and log_std.shape == (batch, action_dim)
    assert jnp.allclose(mu, mu_ref, atol=1e-3, rtol=1e-3), "mu mismatch"
    assert jnp.allclose(log_std, ls_ref, atol=1e-3, rtol=1e-3), "log_std mismatch"

    print("KERNEL_OK")
</pallas_src>

<mosaic_0001>
module attributes {stable_mosaic.version = 11 : i64} {
  func.func @_policy_forward_kernel(%arg0: i32, %arg1: memref<8x16xf32, #tpu.memory_space<vmem>>, %arg2: memref<16x256xbf16, #tpu.memory_space<vmem>>, %arg3: memref<1x256xf32, #tpu.memory_space<vmem>>, %arg4: memref<256x256xbf16, #tpu.memory_space<vmem>>, %arg5: memref<1x256xf32, #tpu.memory_space<vmem>>, %arg6: memref<256x128xbf16, #tpu.memory_space<vmem>>, %arg7: memref<1x128xf32, #tpu.memory_space<vmem>>, %arg8: memref<8x8xf32, #tpu.memory_space<vmem>>, %arg9: memref<8x8xf32, #tpu.memory_space<vmem>>) attributes {dimension_semantics = [#tpu.dimension_semantics<parallel>], iteration_bounds = array<i64: 1>, scalar_prefetch = 0 : i64, scratch_operands = 0 : i64, tpu.core_type = #tpu.core_type<tc>, window_params = [{transform_indices = @transform_0, window_bounds = array<i64: 8, 16>}, {pipeline_mode = #tpu.pipeline_mode<synchronous>, transform_indices = @transform_1, window_bounds = array<i64: 16, 256>}, {pipeline_mode = #tpu.pipeline_mode<synchronous>, transform_indices = @transform_2, window_bounds = array<i64: 1, 256>}, {pipeline_mode = #tpu.pipeline_mode<synchronous>, transform_indices = @transform_3, window_bounds = array<i64: 256, 256>}, {pipeline_mode = #tpu.pipeline_mode<synchronous>, transform_indices = @transform_4, window_bounds = array<i64: 1, 256>}, {pipeline_mode = #tpu.pipeline_mode<synchronous>, transform_indices = @transform_5, window_bounds = array<i64: 256, 128>}, {pipeline_mode = #tpu.pipeline_mode<synchronous>, transform_indices = @transform_6, window_bounds = array<i64: 1, 128>}, {transform_indices = @transform_7, window_bounds = array<i64: 8, 8>}, {transform_indices = @transform_8, window_bounds = array<i64: 8, 8>}]} {
    %c0 = arith.constant 0 : index
    %c0_0 = arith.constant 0 : index
    %0 = vector.load %arg1[%c0, %c0_0] : memref<8x16xf32, #tpu.memory_space<vmem>>, vector<8x16xf32>
    %1 = arith.truncf %0 : vector<8x16xf32> to vector<8x16xbf16>
    %c0_1 = arith.constant 0 : index
    %c0_2 = arith.constant 0 : index
    %2 = vector.load %arg2[%c0_1, %c0_2] : memref<16x256xbf16, #tpu.memory_space<vmem>>, vector<16x256xbf16>
    %cst = arith.constant dense<0.000000e+00> : vector<8x256xf32>
    %3 = tpu.matmul %1, %2, %cst {dimension_numbers = #tpu.dot_dimension_numbers<[1], [0], [0], [1], [0, 0, 1, 1], [], []>} : vector<8x16xbf16>, vector<16x256xbf16>, vector<8x256xf32> -> vector<8x256xf32>
    %c0_3 = arith.constant 0 : index
    %c0_4 = arith.constant 0 : index
    %4 = vector.load %arg3[%c0_3, %c0_4] : memref<1x256xf32, #tpu.memory_space<vmem>>, vector<1x256xf32>
    %5 = vector.broadcast %4 : vector<1x256xf32> to vector<8x256xf32>
    %6 = arith.addf %3, %5 : vector<8x256xf32>
    %cst_5 = arith.constant 0.000000e+00 : f32
    %7 = vector.broadcast %cst_5 : f32 to vector<8x256xf32>
    %8 = arith.maximumf %6, %7 : vector<8x256xf32>
    %9 = arith.truncf %8 : vector<8x256xf32> to vector<8x256xbf16>
    %c0_6 = arith.constant 0 : index
    %c0_7 = arith.constant 0 : index
    %10 = vector.load %arg4[%c0_6, %c0_7] : memref<256x256xbf16, #tpu.memory_space<vmem>>, vector<256x256xbf16>
    %cst_8 = arith.constant dense<0.000000e+00> : vector<8x256xf32>
    %11 = tpu.matmul %9, %10, %cst_8 {dimension_numbers = #tpu.dot_dimension_numbers<[1], [0], [0], [1], [0, 0, 1, 1], [], []>} : vector<8x256xbf16>, vector<256x256xbf16>, vector<8x256xf32> -> vector<8x256xf32>
    %c0_9 = arith.constant 0 : index
    %c0_10 = arith.constant 0 : index
    %12 = vector.load %arg5[%c0_9, %c0_10] : memref<1x256xf32, #tpu.memory_space<vmem>>, vector<1x256xf32>
    %13 = vector.broadcast %12 : vector<1x256xf32> to vector<8x256xf32>
    %14 = arith.addf %11, %13 : vector<8x256xf32>
    %cst_11 = arith.constant 0.000000e+00 : f32
    %15 = vector.broadcast %cst_11 : f32 to vector<8x256xf32>
    %16 = arith.maximumf %14, %15 : vector<8x256xf32>
    %17 = arith.truncf %16 : vector<8x256xf32> to vector<8x256xbf16>
    %c0_12 = arith.constant 0 : index
    %c0_13 = arith.constant 0 : index
    %18 = vector.load %arg6[%c0_12, %c0_13] : memref<256x128xbf16, #tpu.memory_space<vmem>>, vector<256x128xbf16>
    %cst_14 = arith.constant dense<0.000000e+00> : vector<8x128xf32>
    %19 = tpu.matmul %17, %18, %cst_14 {dimension_numbers = #tpu.dot_dimension_numbers<[1], [0], [0], [1], [0, 0, 1, 1], [], []>} : vector<8x256xbf16>, vector<256x128xbf16>, vector<8x128xf32> -> vector<8x128xf32>
    %c0_15 = arith.constant 0 : index
    %c0_16 = arith.constant 0 : index
    %20 = vector.load %arg7[%c0_15, %c0_16] : memref<1x128xf32, #tpu.memory_space<vmem>>, vector<1x128xf32>
    %21 = vector.broadcast %20 : vector<1x128xf32> to vector<8x128xf32>
    %22 = arith.addf %19, %21 : vector<8x128xf32>
    %23 = vector.extract_strided_slice %22 {offsets = [0, 0], sizes = [8, 8], strides = [1, 1]} : vector<8x128xf32> to vector<8x8xf32>
    %c0_17 = arith.constant 0 : index
    %c0_18 = arith.constant 0 : index
    %24 = vector.load %arg8[%c0_17, %c0_18] : memref<8x8xf32, #tpu.memory_space<vmem>>, vector<8x8xf32>
    tpu.vector_store %arg8[%c0_17, %c0_18], %23 {strides = array<i32>} : memref<8x8xf32, #tpu.memory_space<vmem>>, vector<8x8xf32>,
    %c120_i32 = arith.constant 120 : i32
    %25 = tpu.dynamic_rotate %22 by %c120_i32 dim 1 : vector<8x128xf32>, i32 -> vector<8x128xf32>
    %26 = vector.extract_strided_slice %25 {offsets = [0, 0], sizes = [8, 8], strides = [1, 1]} : vector<8x128xf32> to vector<8x8xf32>
    %cst_19 = arith.constant -2.000000e+01 : f32
    %cst_20 = arith.constant 2.000000e+00 : f32
    %27 = vector.broadcast %cst_19 : f32 to vector<8x8xf32>
    %28 = arith.maximumf %27, %26 : vector<8x8xf32>
    %29 = vector.broadcast %cst_20 : f32 to vector<8x8xf32>
    %30 = arith.minimumf %29, %28 : vector<8x8xf32>
    %c0_21 = arith.constant 0 : index
    %c0_22 = arith.constant 0 : index
    %31 = vector.load %arg9[%c0_21, %c0_22] : memref<8x8xf32, #tpu.memory_space<vmem>>, vector<8x8xf32>
    tpu.vector_store %arg9[%c0_21, %c0_22], %30 {strides = array<i32>} : memref<8x8xf32, #tpu.memory_space<vmem>>, vector<8x8xf32>,
    return
  }
  func.func @transform_0(%arg0: i32) -> (i32, i32) {
    %c0_i32 = arith.constant 0 : i32
    %c0_i32_0 = arith.constant 0 : i32
    return %arg0, %c0_i32 : i32, i32
  }
  func.func @transform_1(%arg0: i32) -> (i32, i32) {
    %c0_i32 = arith.constant 0 : i32
    %c0_i32_0 = arith.constant 0 : i32
    %c0_i32_1 = arith.constant 0 : i32
    return %c0_i32, %c0_i32_0 : i32, i32
  }
  func.func @transform_2(%arg0: i32) -> (i32, i32) {
    %c0_i32 = arith.constant 0 : i32
    %c0_i32_0 = arith.constant 0 : i32
    %c0_i32_1 = arith.constant 0 : i32
    return %c0_i32, %c0_i32_0 : i32, i32
  }
  func.func @transform_3(%arg0: i32) -> (i32, i32) {
    %c0_i32 = arith.constant 0 : i32
    %c0_i32_0 = arith.constant 0 : i32
    %c0_i32_1 = arith.constant 0 : i32
    return %c0_i32, %c0_i32_0 : i32, i32
  }
  func.func @transform_4(%arg0: i32) -> (i32, i32) {
    %c0_i32 = arith.constant 0 : i32
    %c0_i32_0 = arith.constant 0 : i32
    %c0_i32_1 = arith.constant 0 : i32
    return %c0_i32, %c0_i32_0 : i32, i32
  }
  func.func @transform_5(%arg0: i32) -> (i32, i32) {
    %c0_i32 = arith.constant 0 : i32
    %c0_i32_0 = arith.constant 0 : i32
    %c0_i32_1 = arith.constant 0 : i32
    return %c0_i32, %c0_i32_0 : i32, i32
  }
  func.func @transform_6(%arg0: i32) -> (i32, i32) {
    %c0_i32 = arith.constant 0 : i32
    %c0_i32_0 = arith.constant 0 : i32
    %c0_i32_1 = arith.constant 0 : i32
    return %c0_i32, %c0_i32_0 : i32, i32
  }
  func.func @transform_7(%arg0: i32) -> (i32, i32) {
    %c0_i32 = arith.constant 0 : i32
    %c0_i32_0 = arith.constant 0 : i32
    return %arg0, %c0_i32 : i32, i32
  }
  func.func @transform_8(%arg0: i32) -> (i32, i32) {
    %c0_i32 = arith.constant 0 : i32
    %c0_i32_0 = arith.constant 0 : i32
    return %arg0, %c0_i32 : i32, i32
  }
}

</mosaic_0001>

<bundles_post_ra>
// kernel: tpu_custom_call.1
= control target key start
LH: loop header
LB: loop body
LE: loop exit
PB: predicated region body
PF: predicated region fallthrough
CT: control target
= control target key end

     0   :  { %14 = vsyncpa [#allocation3], 0  ;;  %s1144_s0 = inlined_call_operand.hbm [shape: f32[8,16], index: 0, kind: input, shape index: {}]   ;;  %s1145_s1 = inlined_call_operand.hbm [shape: bf16[16,256], index: 1, kind: input, shape index: {}]   ;;  %s1146_s2 = inlined_call_operand.hbm [shape: f32[1,256], index: 2, kind: input, shape index: {}]   ;;  %s1147_s3 = inlined_call_operand.hbm [shape: bf16[256,256], index: 3, kind: input, shape index: {}]   ;;  %s1148_s4 = inlined_call_operand.vmem [shape: f32[1,256], index: 4, kind: input, shape index: {}]   ;;  %s1149_s5 = inlined_call_operand.hbm [shape: bf16[256,128], index: 5, kind: input, shape index: {}]   ;;  %s1150_s6 = inlined_call_operand.vmem [shape: f32[1,128], index: 6, kind: input, shape index: {}]   ;;  %s1151_s7 = inlined_call_operand.hbm [shape: f32[8,8], index: 7, kind: output, shape index: {0}]   ;;  %s1152_s8 = inlined_call_operand.hbm [shape: f32[8,8], index: 8, kind: output, shape index: {1}]  }
   0x1   :  { %15 = vsyncpa [#allocation6], 0 }
   0x2   :  { %16 = vsyncpa [#allocation9], 0 }
   0x3   :  { %17 = vsyncpa [#allocation4], 0  ;;  %s34_s29 = sshll.u32 %s1145_s1, 4  ;;  %s35_s29 = int_to_ptr.hbm [resolvable:$true] %s34_s29 }
   0x4   :  { %18 = vsyncpa [#allocation13], 0  ;;  %s1056_s30 = smov [#allocation5]   ;;  %s58_s12 = sshll.u32 %s1147_s3, 4  ;;  %s59_s12 = int_to_ptr.hbm [resolvable:$true] %s58_s12 }
   0x5   :  { %s36_s9 = sshll.u32 %s1056_s30, 4  ;;  %s1057_s13 = smov 128   ;;  %s37_s9 = int_to_ptr.vmem [resolvable:$true] %s36_s9 }
   0x6   :  { %s1058_s14 = smov 8   ;;  %s1059_s15 = smov [#allocation8]  }
   0x7   :  { %42 = dma.hbm_to_vmem [thread:$0]  %s35_s29, 256, %s37_s9, [#allocation6], %s1057_s13, %s1057_s13, %s1058_s14  }
   0x8   :  { %s60_s16 = sshll.u32 %s1059_s15, 4  ;;  %s24_s19 = sshll.u32 %s1144_s0, 4  ;;  %s61_s16 = int_to_ptr.vmem [resolvable:$true] %s60_s16  ;;  %s25_s19 = int_to_ptr.hbm [resolvable:$true] %s24_s19 }
   0x9   :  { %66 = dma.hbm_to_vmem [thread:$0]  %s59_s12, 4096, %s61_s16, [#allocation9], %s1057_s13, %s1057_s13, %s1058_s14  }
   0xa   :  { %s48_s21 = sshll.u32 %s1146_s2, 4  ;;  %s1060_s22 = smov [#allocation2]   ;;  %s49_s21 = int_to_ptr.hbm [resolvable:$true] %s48_s21 }
   0xb   :  { %s26_s23 = sshll.u32 %s1060_s22, 4  ;;  %s1061_s3 = smov [#allocation7]   ;;  %s27_s23 = int_to_ptr.vmem [resolvable:$true] %s26_s23 }
   0xc   :  { %29 = dma.hbm_to_vmem [thread:$0]  %s25_s19, 128, %s27_s23, [#allocation3]  }
   0xd   :  { %s50_s24 = sshll.u32 %s1061_s3, 4  ;;  %s73_s27 = sshll.u32 %s1149_s5, 4  ;;  %s51_s24 = int_to_ptr.vmem [resolvable:$true] %s50_s24  ;;  %s74_s27 = int_to_ptr.hbm [resolvable:$true] %s73_s27 }
   0xe   :  { %53 = dma.hbm_to_vmem [thread:$0]  %s49_s21, 32, %s51_s24, [#allocation6]  }
   0xf   :  { %s1062_s0 = smov [#allocation10]   ;;  %s1063_s29 = smov 64  }
  0x10   :  { %s75_s28 = sshll.u32 %s1062_s0, 4  ;;  %s1064_s30 = smov 4   ;;  %s76_s28 = int_to_ptr.vmem [resolvable:$true] %s75_s28 }
  0x11   :  { %81 = dma.hbm_to_vmem [thread:$0]  %s74_s27, 2048, %s76_s28, [#allocation9], %s1063_s29, %s1063_s29, %s1064_s30  }
  0x12   :  { %1046 = dma.done.wait [#allocation3], 128  }
  0x13   :  { %1047 = vsyncadd [#allocation3], 4294967168 }
  0x14   :  { %1048 = dma.done.wait [#allocation6], 288  }
  0x15   :  { %1049 = vsyncadd [#allocation6], 4294967008 }
  0x16   :  { %1050 = dma.done.wait [#allocation9], 6144  }
  0x17   :  { %1051 = vsyncadd [#allocation9], 4294961152  ;;  %v615_v0 = vld [vmem:[#allocation5] sm:$0xf]  ;;  %v816_v1 = vld [vmem:[#allocation5 + $0x4] sm:$0xf0] }
  0x18   :  { %v815_v2 = vld [vmem:[#allocation5 + $0x4] sm:$0xf]  ;;  %v616_v3 = vor.u32 %v816_v1, %v615_v0  ;;  %v617_v4 = vld [vmem:[#allocation5 + $0x8] sm:$0xf0]  ;;  %v105_v5 = vld [vmem:[#allocation2] sm:$0xff]  ;;  %vm125_vm0 = vcmask 130048  }
  0x19   :  { %v681_v6 = vld [vmem:[#allocation8 + $0x70] sm:$0xf]  ;;  %v620_v7 = vor.u32 %v815_v2, %v617_v4  ;;  %v106_v8 = vpack.c.bf16 %v105_v5, %v105_v5  ;;  %v832_v9 = vld [vmem:[#allocation8 + $0x74] sm:$0xf0]  ;;  %v831_v14 = vld [vmem:[#allocation8 + $0x74] sm:$0xf] }
  0x1a   :  { %v745_v10 = vld [vmem:[#allocation8 + $0xf0] sm:$0xf]  ;;  %v848_v11 = vld [vmem:[#allocation8 + $0xf4] sm:$0xf0]  ;;  %136 = vmatpush.bf16.msra.mxu0 %v616_v3  ;;  %v682_v12 = vor.u32 %v832_v9, %v681_v6  ;;  %v683_v15 = vld [vmem:[#allocation8 + $0x78] sm:$0xf0] }
  0x1b   :  { %v746_v13 = vor.u32 %v848_v11, %v745_v10  ;;  %v847_v16 = vld [vmem:[#allocation8 + $0xf4] sm:$0xf]  ;;  %149 = vmatpush.bf16.msra.mxu1 %v620_v7  ;;  %v686_v17 = vor.u32 %v831_v14, %v683_v15  ;;  %v747_v18 = vld [vmem:[#allocation8 + $0xf8] sm:$0xf0]  ;;  %v673_v19 = vld [vmem:[#allocation8 + $0x60] sm:$0xf] }
  0x1c   :  { %v830_v20 = vld [vmem:[#allocation8 + $0x64] sm:$0xf0]  ;;  %357 = vmatpush.bf16.msra.mxu2 %v682_v12  ;;  %v750_v21 = vor.u32 %v847_v16, %v747_v18  ;;  %v737_v23 = vld [vmem:[#allocation8 + $0xe0] sm:$0xf]  ;;  %v829_v25 = vld [vmem:[#allocation8 + $0x64] sm:$0xf] }
  0x1d   :  { %370 = vmatpush.bf16.msra.mxu3 %v746_v13  ;;  %v674_v22 = vor.u32 %v830_v20, %v673_v19  ;;  %v846_v24 = vld [vmem:[#allocation8 + $0xe4] sm:$0xf0]  ;;  %621 = vmatmul.msk.bf16.vlgmr.msra.gmra.mxu0 %vm125_vm0, %v106_v8  ;;  %v675_v27 = vld [vmem:[#allocation8 + $0x68] sm:$0xf0]  ;;  %v845_v28 = vld [vmem:[#allocation8 + $0xe4] sm:$0xf] }
  0x1e   :  { %v738_v26 = vor.u32 %v846_v24, %v737_v23  ;;  %v739_v29 = vld [vmem:[#allocation8 + $0xe8] sm:$0xf0]  ;;  %622 = vmatmul.msk.bf16.vlgmr.msra.gmra.mxu1 %vm125_vm0, %v106_v8  ;;  %383 = vmatpush.bf16.msrb.mxu0 %v686_v17  ;;  %v678_v30 = vor.u32 %v829_v25, %v675_v27  ;;  %v665_v31 = vld [vmem:[#allocation8 + $0x50] sm:$0xf]  ;;  %v828_v32 = vld [vmem:[#allocation8 + $0x54] sm:$0xf0] }
  0x1f   :  { %v729_v33 = vld [vmem:[#allocation8 + $0xd0] sm:$0xf]  ;;  %396 = vmatpush.bf16.msrb.mxu1 %v750_v21  ;;  %v742_v34 = vor.u32 %v845_v28, %v739_v29  ;;  %v844_v35 = vld [vmem:[#allocation8 + $0xd4] sm:$0xf0]  ;;  %v827_v36 = vld [vmem:[#allocation8 + $0x54] sm:$0xf]  ;;  %v666_v38 = vor.u32 %v828_v32, %v665_v31 }
  0x20   :  { %v667_v37 = vld [vmem:[#allocation8 + $0x58] sm:$0xf0]  ;;  %358 = vmatpush.bf16.msra.mxu2 %v674_v22  ;;  %v730_v39 = vor.u32 %v844_v35, %v729_v33  ;;  %v843_v40 = vld [vmem:[#allocation8 + $0xd4] sm:$0xf]  ;;  %v657_v42 = vld [vmem:[#allocation8 + $0x40] sm:$0xf] }
  0x21   :  { %371 = vmatpush.bf16.msra.mxu3 %v738_v26  ;;  %v731_v41 = vld [vmem:[#allocation8 + $0xd8] sm:$0xf0]  ;;  %v826_v43 = vld [vmem:[#allocation8 + $0x44] sm:$0xf0]  ;;  %v721_v44 = vld [vmem:[#allocation8 + $0xc0] sm:$0xf]  ;;  %v670_v46 = vor.u32 %v827_v36, %v667_v37 }
  0x22   :  { %v842_v45 = vld [vmem:[#allocation8 + $0xc4] sm:$0xf0]  ;;  %384 = vmatpush.bf16.msrb.mxu0 %v678_v30  ;;  %v734_v47 = vor.u32 %v843_v40, %v731_v41  ;;  %v825_v48 = vld [vmem:[#allocation8 + $0x44] sm:$0xf]  ;;  %v659_v49 = vld [vmem:[#allocation8 + $0x48] sm:$0xf0]  ;;  %v658_v50 = vor.u32 %v826_v43, %v657_v42 }
  0x23   :  { %397 = vmatpush.bf16.msrb.mxu1 %v742_v34  ;;  %v722_v51 = vor.u32 %v842_v45, %v721_v44  ;;  %v841_v52 = vld [vmem:[#allocation8 + $0xc4] sm:$0xf]  ;;  %v723_v53 = vld [vmem:[#allocation8 + $0xc8] sm:$0xf0]  ;;  %v649_v54 = vld [vmem:[#allocation8 + $0x30] sm:$0xf]  ;;  %v662_v58 = vor.u32 %v825_v48, %v659_v49 }
  0x24   :  { %359 = vmatpush.bf16.msra.mxu2 %v666_v38  ;;  %v824_v55 = vld [vmem:[#allocation8 + $0x34] sm:$0xf0]  ;;  %v713_v56 = vld [vmem:[#allocation8 + $0xb0] sm:$0xf]  ;;  %v726_v59 = vor.u32 %v841_v52, %v723_v53  ;;  %v823_v60 = vld [vmem:[#allocation8 + $0x34] sm:$0xf] }
  0x25   :  { %372 = vmatpush.bf16.msra.mxu3 %v730_v39  ;;  %v840_v57 = vld [vmem:[#allocation8 + $0xb4] sm:$0xf0]  ;;  %v651_v61 = vld [vmem:[#allocation8 + $0x38] sm:$0xf0]  ;;  %v839_v62 = vld [vmem:[#allocation8 + $0xb4] sm:$0xf]  ;;  %v650_v63 = vor.u32 %v824_v55, %v649_v54 }
  0x26   :  { %385 = vmatpush.bf16.msrb.mxu0 %v670_v46  ;;  %v714_v0 = vor.u32 %v840_v57, %v713_v56  ;;  %v715_v1 = vld [vmem:[#allocation8 + $0xb8] sm:$0xf0]  ;;  %v641_v2 = vld [vmem:[#allocation8 + $0x20] sm:$0xf]  ;;  %v822_v3 = vld [vmem:[#allocation8 + $0x24] sm:$0xf0]  ;;  %v654_v6 = vor.u32 %v823_v60, %v651_v61 }
  0x27   :  { %398 = vmatpush.bf16.msrb.mxu1 %v734_v47  ;;  %v705_v4 = vld [vmem:[#allocation8 + $0xa0] sm:$0xf]  ;;  %v838_v5 = vld [vmem:[#allocation8 + $0xa4] sm:$0xf0]  ;;  %v718_v7 = vor.u32 %v839_v62, %v715_v1  ;;  %v821_v8 = vld [vmem:[#allocation8 + $0x24] sm:$0xf]  ;;  %v642_v10 = vor.u32 %v822_v3, %v641_v2 }
  0x28   :  { %360 = vmatpush.bf16.msra.mxu2 %v658_v50  ;;  %v643_v9 = vld [vmem:[#allocation8 + $0x28] sm:$0xf0]  ;;  %v706_v11 = vor.u32 %v838_v5, %v705_v4  ;;  %v837_v12 = vld [vmem:[#allocation8 + $0xa4] sm:$0xf]  ;;  %v633_v16 = vld [vmem:[#allocation8 + $0x10] sm:$0xf] }
  0x29   :  { %373 = vmatpush.bf16.msra.mxu3 %v722_v51  ;;  %v707_v13 = vld [vmem:[#allocation8 + $0xa8] sm:$0xf0]  ;;  %v646_v14 = vor.u32 %v821_v8, %v643_v9  ;;  %v820_v17 = vld [vmem:[#allocation8 + $0x14] sm:$0xf0]  ;;  %v697_v18 = vld [vmem:[#allocation8 + $0x90] sm:$0xf] }
  0x2a   :  { %386 = vmatpush.bf16.msrb.mxu0 %v662_v58  ;;  %v710_v15 = vor.u32 %v837_v12, %v707_v13  ;;  %v634_v19 = vor.u32 %v820_v17, %v633_v16  ;;  %v836_v20 = vld [vmem:[#allocation8 + $0x94] sm:$0xf0]  ;;  %v819_v21 = vld [vmem:[#allocation8 + $0x14] sm:$0xf]  ;;  %v635_v22 = vld [vmem:[#allocation8 + $0x18] sm:$0xf0] }
  0x2b   :  { %399 = vmatpush.bf16.msrb.mxu1 %v726_v59  ;;  %v698_v23 = vor.u32 %v836_v20, %v697_v18  ;;  %v638_v24 = vor.u32 %v819_v21, %v635_v22  ;;  %v835_v25 = vld [vmem:[#allocation8 + $0x94] sm:$0xf]  ;;  %v699_v26 = vld [vmem:[#allocation8 + $0x98] sm:$0xf0]  ;;  %v625_v28 = vld [vmem:[#allocation8] sm:$0xf] }
  0x2c   :  { %361 = vmatpush.bf16.msra.mxu2 %v650_v63  ;;  %v702_v27 = vor.u32 %v835_v25, %v699_v26  ;;  %v818_v29 = vld [vmem:[#allocation8 + $0x4] sm:$0xf0]  ;;  %v689_v30 = vld [vmem:[#allocation8 + $0x80] sm:$0xf]  ;;  %v817_v33 = vld [vmem:[#allocation8 + $0x4] sm:$0xf] }
  0x2d   :  { %374 = vmatpush.bf16.msra.mxu3 %v714_v0  ;;  %v626_v31 = vor.u32 %v818_v29, %v625_v28  ;;  %v834_v32 = vld [vmem:[#allocation8 + $0x84] sm:$0xf0]  ;;  %v627_v34 = vld [vmem:[#allocation8 + $0x8] sm:$0xf0]  ;;  %v833_v37 = vld [vmem:[#allocation8 + $0x84] sm:$0xf] }
  0x2e   :  { %387 = vmatpush.bf16.msrb.mxu0 %v654_v6  ;;  %v690_v35 = vor.u32 %v834_v32, %v689_v30  ;;  %v630_v36 = vor.u32 %v817_v33, %v627_v34  ;;  %v691_v38 = vld [vmem:[#allocation8 + $0x88] sm:$0xf0]  ;;  %v864_v40 = vld [vmem:[#allocation10 + $0x78] sm:$0xff]  ;;  %v863_v42 = vld [vmem:[#allocation10 + $0x70] sm:$0xff]  ;;  %s1065_s10 = smov [#allocation11]   ;;  %s585_s14 = sshll.u32 %s1151_s7, 4  ;;  %s586_s14 = int_to_ptr.hbm [resolvable:$true] %s585_s14 }
  0x2f   :  { %400 = vmatpush.bf16.msrb.mxu1 %v718_v7  ;;  %v694_v39 = vor.u32 %v833_v37, %v691_v38  ;;  %v856_v41 = vld [vmem:[#allocation10 + $0x38] sm:$0xff]  ;;  %v855_v43 = vld [vmem:[#allocation10 + $0x30] sm:$0xff]  ;;  %v862_v44 = vld [vmem:[#allocation10 + $0x68] sm:$0xff]  ;;  %s583_s11 = sshll.u32 %s1065_s10, 4  ;;  %vm571_vm1 = vcmask 64512   ;;  %s1066_s15 = smov 120   ;;  %s584_s11 = int_to_ptr.vmem [resolvable:$true] %s583_s11 }
  0x30   :  { %362 = vmatpush.bf16.msra.mxu2 %v642_v10  ;;  %v854_v45 = vld [vmem:[#allocation10 + $0x28] sm:$0xff]  ;;  %v861_v46 = vld [vmem:[#allocation10 + $0x60] sm:$0xff]  ;;  %v860_v48 = vld [vmem:[#allocation10 + $0x58] sm:$0xff]  ;;  %s596_s19 = sshll.u32 %s1152_s8, 4  ;;  %s597_s19 = int_to_ptr.hbm [resolvable:$true] %s596_s19 }
  0x31   :  { %375 = vmatpush.bf16.msra.mxu3 %v706_v11  ;;  %v853_v47 = vld [vmem:[#allocation10 + $0x20] sm:$0xff]  ;;  %v109_v49 = vld [vmem:[#allocation7] sm:$0x3]  ;;  %v859_v50 = vld [vmem:[#allocation10 + $0x50] sm:$0xff] }
  0x32   :  { %388 = vmatpush.bf16.msrb.mxu0 %v646_v14  ;;  %v111_v51 = vperm.slane %v109_v49, 0  ;;  %v112_v52 = vperm.slane %v109_v49, 1  ;;  %v852_v63 = vld [vmem:[#allocation10 + $0x18] sm:$0xff]  ;;  %v858_v0 = vld [vmem:[#allocation10 + $0x48] sm:$0xff]  ;;  %v851_v1 = vld [vmem:[#allocation10 + $0x10] sm:$0xff] }
  0x33   :  { %401 = vmatpush.bf16.msrb.mxu1 %v710_v15  ;;  %v857_v2 = vld [vmem:[#allocation10 + $0x40] sm:$0xff]  ;;  %v850_v3 = vld [vmem:[#allocation10 + $0x8] sm:$0xff] }
  0x34   :  { %363 = vmatpush.bf16.msra.mxu2 %v634_v19  ;;  %v849_v4 = vld [vmem:[#allocation10] sm:$0xff] }
  0x35   :  { %376 = vmatpush.bf16.msra.mxu3 %v698_v23  ;;  %v191_v5 = vld [vmem:[%s1148_s4] sm:$0x3] }
  0x36   :  { %389 = vmatpush.bf16.msrb.mxu0 %v638_v24  ;;  %v194_v6 = vperm.slane %v191_v5, 1  ;;  %v193_v11 = vperm.slane %v191_v5, 0  ;;  %v877_v25 = vld [vmem:[%s1150_s6] ss:$0 sm:$0xff]  ;;  %s1067_s6 = smov [#allocation12]  }
  0x37   :  { %402 = vmatpush.bf16.msrb.mxu1 %v702_v27  ;;  %s594_s16 = sshll.u32 %s1067_s6, 4  ;;  %s595_s16 = int_to_ptr.vmem [resolvable:$true] %s594_s16 }
  0x38   :  { %364 = vmatpush.bf16.msra.mxu2 %v626_v31 }
  0x39   :  { %377 = vmatpush.bf16.msra.mxu3 %v690_v35 }
  0x3a   :  { %390 = vmatpush.bf16.msrb.mxu0 %v630_v36 }
  0x3b   :  { %403 = vmatpush.bf16.msrb.mxu1 %v694_v39 }
  0x3c   :  { %545 = vmatpush.bf16.msrb.mxu2 %v856_v41 }
  0x3d   :  { %558 = vmatpush.bf16.msrb.mxu3 %v864_v40 }
  0x40   :  { %546 = vmatpush.bf16.msrb.mxu2 %v855_v43 }
  0x41   :  { %559 = vmatpush.bf16.msrb.mxu3 %v863_v42 }
  0x44   :  { %547 = vmatpush.bf16.msrb.mxu2 %v854_v45 }
  0x45   :  { %560 = vmatpush.bf16.msrb.mxu3 %v862_v44 }
  0x48   :  { %548 = vmatpush.bf16.msrb.mxu2 %v853_v47 }
  0x49   :  { %561 = vmatpush.bf16.msrb.mxu3 %v861_v46 }
  0x4c   :  { %549 = vmatpush.bf16.msrb.mxu2 %v852_v63 }
  0x4d   :  { %562 = vmatpush.bf16.msrb.mxu3 %v860_v48 }
  0x50   :  { %550 = vmatpush.bf16.msrb.mxu2 %v851_v1 }
  0x51   :  { %563 = vmatpush.bf16.msrb.mxu3 %v859_v50 }
  0x54   :  { %551 = vmatpush.bf16.msrb.mxu2 %v850_v3 }
  0x55   :  { %564 = vmatpush.bf16.msrb.mxu3 %v858_v0 }
  0x58   :  { %552 = vmatpush.bf16.msrb.mxu2 %v849_v4 }
  0x59   :  { %565 = vmatpush.bf16.msrb.mxu3 %v857_v2 }
  0x9a   :  { %v138_v53 = vpop.f32.mrf.mxu0 }
  0x9b   :  { %v139_v54 = vadd.f32 %v138_v53, %v111_v51  ;;  %v151_v55 = vpop.f32.mrf.mxu1 }
  0x9c   :  { %v152_v56 = vadd.f32 %v151_v55, %v112_v52 }
  0x9d   :  { %v155_v57 = vmax.f32 %v139_v54, 0.0 }
  0x9e   :  { %v156_v58 = vmax.f32 %v152_v56, 0.0 }
  0x9f   :  { %v157_v59 = vpack.c.bf16 %v155_v57, %v155_v57 }
  0xa0   :  { %v158_v60 = vpack.c.bf16 %v156_v58, %v156_v58 }
  0xa1   :  { %365 = vmatmul.bf16.vlgmr.msra.gmra.mxu2 %v157_v59  ;;  %391 = vmatmul.bf16.vlgmr.msrb.gmra.mxu0 %v157_v59 }
  0xa2   :  { %378 = vmatmul.bf16.vlgmr.msra.gmra.mxu3 %v158_v60  ;;  %404 = vmatmul.bf16.vlgmr.msrb.gmra.mxu1 %v158_v60  ;;  %v140_v61 = vpop.f32.mrf.mxu0 }
  0xa3   :  { %v153_v62 = vpop.f32.mrf.mxu1 }
 0x11e   :  { %v392_v7 = vpop.f32.mrf.mxu0 }
 0x11f   :  { %v393_v8 = vadd.f32 %v392_v7, %v194_v6  ;;  %v405_v9 = vpop.f32.mrf.mxu1 }
 0x121   :  { %v406_v10 = vadd.f32 %v405_v9, %v393_v8 }
 0x123   :  { %v410_v12 = vmax.f32 %v406_v10, 0.0 }
 0x124   :  { %v366_v13 = vpop.f32.mrf.mxu2 }
 0x125   :  { %v412_v14 = vpack.c.bf16 %v410_v12, %v410_v12  ;;  %v367_v15 = vadd.f32 %v366_v13, %v193_v11  ;;  %v379_v16 = vpop.f32.mrf.mxu3 }
 0x126   :  { %v394_v17 = vpop.f32.mrf.mxu0 }
 0x127   :  { %v380_v18 = vadd.f32 %v379_v16, %v367_v15  ;;  %v407_v19 = vpop.f32.mrf.mxu1  ;;  %566 = vmatmul.bf16.vlgmr.msrb.gmra.mxu3 %v412_v14 }
 0x129   :  { %v409_v20 = vmax.f32 %v380_v18, 0.0 }
 0x12b   :  { %v411_v21 = vpack.c.bf16 %v409_v20, %v409_v20 }
 0x12c   :  { %v368_v22 = vpop.f32.mrf.mxu2 }
 0x12d   :  { %v381_v23 = vpop.f32.mrf.mxu3  ;;  %553 = vmatmul.bf16.vlgmr.msrb.gmra.mxu2 %v411_v21 }
 0x1aa   :  { %v567_v24 = vpop.f32.mrf.mxu3 }
 0x1b0   :  { %v554_v26 = vpop.f32.mrf.mxu2 }
 0x1b1   :  { %v555_v27 = vadd.f32 %v877_v25, %v554_v26 }
 0x1b2   :  { %v569_v28 = vpop.f32.mrf.mxu3 }
 0x1b3   :  { %v568_v29 = vadd.f32 %v567_v24, %v555_v27 }
 0x1b5   :  { %573 = vrot.lane.b32.xlu0 %v568_v29, %s1066_s15  ;;  %572 = vst.msk [vmem:[#allocation11] sm:$0xff] %vm571_vm1, %v568_v29 }
 0x1b6   :  { %588 = dma.vmem_to_hbm [thread:$0]  %s584_s11, 128, %s586_s14, [#allocation4]  }
 0x1b8   :  { %v556_v30 = vpop.f32.mrf.mxu2 }
 0x227   :  { %v574_v31 = vpop.permute.xlu0 %573 }
 0x228   :  { %v575_v32 = vmax.f32 %v574_v31, -20.0 }
 0x22a   :  { %v576_v33 = vmin.f32 %v575_v32, 2.0 }
 0x22c   :  { %577 = vst.msk [vmem:[#allocation12] sm:$0xff] %vm571_vm1, %v576_v33 }
 0x22d   :  { %599 = dma.vmem_to_hbm [thread:$0]  %s595_s16, 128, %s597_s19, [#allocation13]  }
 0x22e   :  { %1052 = dma.done.wait [#allocation4], 128  }
 0x22f   :  { %1053 = vsyncadd [#allocation4], 4294967168 }
 0x230   :  { %1054 = dma.done.wait [#allocation13], 128  }
 0x231   :  { %1055 = vsyncadd [#allocation13], 4294967168 }
 0x232   :  { %608 = vsyncpa [#allocation3], 1 }
 0x233   :  { %609 = vsyncpa [#allocation6], 1 }
 0x234   :  { %610 = vsyncpa [#allocation9], 1 }
 0x235   :  { %611 = vsyncpa [#allocation4], 1 }
 0x236   :  { %612 = vsyncpa [#allocation13], 1 }

</bundles_post_ra>
